<compile_context>
chip_gen: v7x
topology: tpu7x:2x2x1
jax: 0.10.0
libtpu: 0.0.40
codegen_flags: <defaults>
</compile_context>

<pallas_src>
import jax
import jax.numpy as jnp
from jax.experimental import pallas as pl
from jax.experimental.pallas import tpu as pltpu

INPUT_SIZE = 100
HIDDEN_SIZE = 256
TILE_B_MAX = 4096          # ~14 MiB per-tile VMEM footprint (see vmem_limit below)
VMEM_LIMIT_BYTES = 32 * 1024 * 1024   # fits v5e/v6e (128 MiB phys) and v7x (64 MiB phys)


def _round_up(n, m):
    return (n + m - 1) // m * m


def _choose_tile_b(B):
    """Pick the batch tile.

    * B <= 8: one full-dim block (satisfies the (8,128) rule via == full dim).
    * B  > 8: aim for >= 2 grid steps (so dimension_semantics=("parallel",)
      can shard across v7x's two TensorCores), tile a multiple of 8, capped at
      TILE_B_MAX. Partial last blocks are handled by Pallas masking.
    """
    if B <= 8:
        return B
    half = _round_up(pl.cdiv(B, 2), 8)
    return min(TILE_B_MAX, half)


def _disc_kernel(x_ref, w1_ref, b1_ref, w2_ref, b2_ref, w3_ref, b3_ref, o_ref):
    # fc1 + ReLU: cast x to bf16 in-kernel (VPU), MXU matmul with f32 acc.
    # K = 100 is handled by Mosaic's internal zero-padding of the contraction.
    x = x_ref[...].astype(jnp.bfloat16)
    h1 = jnp.dot(x, w1_ref[...], preferred_element_type=jnp.float32)
    h1 = jnp.maximum(h1 + b1_ref[...], 0.0)
    # fc2 + ReLU.
    h2 = jnp.dot(h1.astype(jnp.bfloat16), w2_ref[...],
                 preferred_element_type=jnp.float32)
    h2 = jnp.maximum(h2 + b2_ref[...], 0.0)
    # fc3 (out_features == 1): VPU multiply + cross-lane (XLU) reduce instead
    # of an N=1 MXU pass; output block stays (tile_b, 1).
    logits = jnp.sum(h2 * w3_ref[...], axis=-1, keepdims=True) + b3_ref[...]
    # sigmoid: exp and the approximate reciprocal both hit the EUP slot.
    o_ref[...] = pl.reciprocal(1.0 + jnp.exp(-logits), approx=True).astype(o_ref.dtype)


def prepare_params(params):
    """One-time weight prep: bf16 MXU operands + reshaped biases.

    Call once (outside the training step); the result is what
    discriminator_forward consumes every step.
    """
    return {
        "w1": params["w1"].astype(jnp.bfloat16),                       # (100, 256)
        "b1": params["b1"].reshape(1, HIDDEN_SIZE).astype(jnp.float32),
        "w2": params["w2"].astype(jnp.bfloat16),                       # (256, 256)
        "b2": params["b2"].reshape(1, HIDDEN_SIZE).astype(jnp.float32),
        "w3": params["w3"].reshape(1, HIDDEN_SIZE).astype(jnp.float32),  # (256,1)->row
        "b3": params["b3"].reshape(1, 1).astype(jnp.float32),
    }


@jax.jit
def discriminator_forward(x, prepared):
    """x: (B, INPUT_SIZE) float32; prepared: output of prepare_params()."""
    B, K = x.shape
    assert K == INPUT_SIZE

    tile_b = _choose_tile_b(B)
    grid = (pl.cdiv(B, tile_b),)

    out = pl.pallas_call(
        _disc_kernel,
        out_shape=jax.ShapeDtypeStruct((B, 1), jnp.float32),
        grid=grid,
        in_specs=[
            # x: streamed per batch tile, read as f32 straight from HBM.
            pl.BlockSpec((tile_b, INPUT_SIZE), lambda i: (i, 0)),
            # weights / biases: constant index_map -> VMEM-resident across steps.
            pl.BlockSpec((INPUT_SIZE, HIDDEN_SIZE), lambda i: (0, 0)),
            pl.BlockSpec((1, HIDDEN_SIZE), lambda i: (0, 0)),
            pl.BlockSpec((HIDDEN_SIZE, HIDDEN_SIZE), lambda i: (0, 0)),
            pl.BlockSpec((1, HIDDEN_SIZE), lambda i: (0, 0)),
            pl.BlockSpec((1, HIDDEN_SIZE), lambda i: (0, 0)),
            pl.BlockSpec((1, 1), lambda i: (0, 0)),
        ],
        out_specs=pl.BlockSpec((tile_b, 1), lambda i: (i, 0)),
        compiler_params=pltpu.CompilerParams(
            dimension_semantics=("parallel",),
            vmem_limit_bytes=VMEM_LIMIT_BYTES),
    )(x, prepared["w1"], prepared["b1"], prepared["w2"], prepared["b2"],
      prepared["w3"], prepared["b3"])
    return out


def init_params(key, input_size=INPUT_SIZE, hidden_size=HIDDEN_SIZE):
    """Mimics nn.Linear's U(-1/sqrt(fan_in), 1/sqrt(fan_in)) init.

    Weights are stored as (in, out) so the kernel computes x @ W + b.
    """
    ks = jax.random.split(key, 6)

    def uni(k, shape, fan_in):
        bound = 1.0 / jnp.sqrt(jnp.float32(fan_in))
        return jax.random.uniform(k, shape, jnp.float32, -bound, bound)

    return {
        "w1": uni(ks[0], (input_size, hidden_size), input_size),
        "b1": uni(ks[1], (hidden_size,), input_size),
        "w2": uni(ks[2], (hidden_size, hidden_size), hidden_size),
        "b2": uni(ks[3], (hidden_size,), hidden_size),
        "w3": uni(ks[4], (hidden_size, 1), hidden_size),
        "b3": uni(ks[5], (1,), hidden_size),
    }


def _reference_forward(x, p):
    h1 = jnp.maximum(x @ p["w1"] + p["b1"], 0.0)
    h2 = jnp.maximum(h1 @ p["w2"] + p["b2"], 0.0)
    return jax.nn.sigmoid(h2 @ p["w3"] + p["b3"])


if __name__ == "__main__":
    key = jax.random.PRNGKey(0)
    k_x, k_p = jax.random.split(key)

    params = init_params(k_p)
    prepared = prepare_params(params)

    # Small single-tile call (matches the module's input_size=100).
    B = 8
    x = jax.random.normal(k_x, (B, INPUT_SIZE), jnp.float32)
    out = jax.block_until_ready(discriminator_forward(x, prepared))
    ref = _reference_forward(x, params)
    assert out.shape == (B, 1), out.shape
    # bf16 MXU inputs with f32 accumulation + approx sigmoid -> small slack.
    assert jnp.allclose(out, ref, atol=2e-2, rtol=2e-2), "mismatch vs reference (B=8)"

    # Exercise the multi-tile + partial-last-block path (grid=2, masked tail).
    B2 = 12
    x2 = jax.random.normal(k_x, (B2, INPUT_SIZE), jnp.float32)
    out2 = jax.block_until_ready(discriminator_forward(x2, prepared))
    ref2 = _reference_forward(x2, params)
    assert out2.shape == (B2, 1), out2.shape
    assert jnp.allclose(out2, ref2, atol=2e-2, rtol=2e-2), "mismatch vs reference (B=12)"

    print("KERNEL_OK")
</pallas_src>

<mosaic_0001>
module attributes {stable_mosaic.version = 11 : i64} {
  func.func @_disc_kernel(%arg0: i32, %arg1: memref<8x100xf32, #tpu.memory_space<vmem>>, %arg2: memref<100x256xbf16, #tpu.memory_space<vmem>>, %arg3: memref<1x256xf32, #tpu.memory_space<vmem>>, %arg4: memref<256x256xbf16, #tpu.memory_space<vmem>>, %arg5: memref<1x256xf32, #tpu.memory_space<vmem>>, %arg6: memref<1x256xf32, #tpu.memory_space<vmem>>, %arg7: memref<1x1xf32, #tpu.memory_space<vmem>>, %arg8: memref<8x1xf32, #tpu.memory_space<vmem>>) attributes {dimension_semantics = [#tpu.dimension_semantics<parallel>], iteration_bounds = array<i64: 1>, scalar_prefetch = 0 : i64, scratch_operands = 0 : i64, tpu.core_type = #tpu.core_type<tc>, window_params = [{transform_indices = @transform_0, window_bounds = array<i64: 8, 100>}, {pipeline_mode = #tpu.pipeline_mode<synchronous>, transform_indices = @transform_1, window_bounds = array<i64: 100, 256>}, {pipeline_mode = #tpu.pipeline_mode<synchronous>, transform_indices = @transform_2, window_bounds = array<i64: 1, 256>}, {pipeline_mode = #tpu.pipeline_mode<synchronous>, transform_indices = @transform_3, window_bounds = array<i64: 256, 256>}, {pipeline_mode = #tpu.pipeline_mode<synchronous>, transform_indices = @transform_4, window_bounds = array<i64: 1, 256>}, {pipeline_mode = #tpu.pipeline_mode<synchronous>, transform_indices = @transform_5, window_bounds = array<i64: 1, 256>}, {pipeline_mode = #tpu.pipeline_mode<synchronous>, transform_indices = @transform_6, window_bounds = array<i64: 1, 1>}, {transform_indices = @transform_7, window_bounds = array<i64: 8, 1>}]} {
    %c0 = arith.constant 0 : index
    %c0_0 = arith.constant 0 : index
    %0 = vector.load %arg1[%c0, %c0_0] : memref<8x100xf32, #tpu.memory_space<vmem>>, vector<8x100xf32>
    %1 = arith.truncf %0 : vector<8x100xf32> to vector<8x100xbf16>
    %c0_1 = arith.constant 0 : index
    %c0_2 = arith.constant 0 : index
    %2 = vector.load %arg2[%c0_1, %c0_2] : memref<100x256xbf16, #tpu.memory_space<vmem>>, vector<100x256xbf16>
    %cst = arith.constant dense<0.000000e+00> : vector<8x256xf32>
    %3 = tpu.matmul %1, %2, %cst {dimension_numbers = #tpu.dot_dimension_numbers<[1], [0], [0], [1], [0, 0, 1, 1], [], []>} : vector<8x100xbf16>, vector<100x256xbf16>, vector<8x256xf32> -> vector<8x256xf32>
    %c0_3 = arith.constant 0 : index
    %c0_4 = arith.constant 0 : index
    %4 = vector.load %arg3[%c0_3, %c0_4] : memref<1x256xf32, #tpu.memory_space<vmem>>, vector<1x256xf32>
    %5 = vector.broadcast %4 : vector<1x256xf32> to vector<8x256xf32>
    %6 = arith.addf %3, %5 : vector<8x256xf32>
    %cst_5 = arith.constant 0.000000e+00 : f32
    %7 = vector.broadcast %cst_5 : f32 to vector<8x256xf32>
    %8 = arith.maximumf %6, %7 : vector<8x256xf32>
    %9 = arith.truncf %8 : vector<8x256xf32> to vector<8x256xbf16>
    %c0_6 = arith.constant 0 : index
    %c0_7 = arith.constant 0 : index
    %10 = vector.load %arg4[%c0_6, %c0_7] : memref<256x256xbf16, #tpu.memory_space<vmem>>, vector<256x256xbf16>
    %cst_8 = arith.constant dense<0.000000e+00> : vector<8x256xf32>
    %11 = tpu.matmul %9, %10, %cst_8 {dimension_numbers = #tpu.dot_dimension_numbers<[1], [0], [0], [1], [0, 0, 1, 1], [], []>} : vector<8x256xbf16>, vector<256x256xbf16>, vector<8x256xf32> -> vector<8x256xf32>
    %c0_9 = arith.constant 0 : index
    %c0_10 = arith.constant 0 : index
    %12 = vector.load %arg5[%c0_9, %c0_10] : memref<1x256xf32, #tpu.memory_space<vmem>>, vector<1x256xf32>
    %13 = vector.broadcast %12 : vector<1x256xf32> to vector<8x256xf32>
    %14 = arith.addf %11, %13 : vector<8x256xf32>
    %cst_11 = arith.constant 0.000000e+00 : f32
    %15 = vector.broadcast %cst_11 : f32 to vector<8x256xf32>
    %16 = arith.maximumf %14, %15 : vector<8x256xf32>
    %c0_12 = arith.constant 0 : index
    %c0_13 = arith.constant 0 : index
    %17 = vector.load %arg6[%c0_12, %c0_13] : memref<1x256xf32, #tpu.memory_space<vmem>>, vector<1x256xf32>
    %18 = vector.broadcast %17 : vector<1x256xf32> to vector<8x256xf32>
    %19 = arith.mulf %16, %18 : vector<8x256xf32>
    %cst_14 = arith.constant dense<0.000000e+00> : vector<8xf32>
    %20 = vector.multi_reduction <add>, %19, %cst_14 [1] : vector<8x256xf32> to vector<8xf32>
    %21 = vector.shape_cast %20 : vector<8xf32> to vector<8x1xf32>
    %c0_15 = arith.constant 0 : index
    %c0_16 = arith.constant 0 : index
    %22 = vector.load %arg7[%c0_15, %c0_16] : memref<1x1xf32, #tpu.memory_space<vmem>>, vector<1x1xf32>
    %23 = vector.broadcast %22 : vector<1x1xf32> to vector<8x1xf32>
    %24 = arith.addf %21, %23 : vector<8x1xf32>
    %cst_17 = arith.constant 0.000000e+00 : f32
    %25 = vector.broadcast %cst_17 : f32 to vector<8x1xf32>
    %26 = arith.subf %25, %24 : vector<8x1xf32>
    %27 = math.exp %26 : vector<8x1xf32>
    %cst_18 = arith.constant 1.000000e+00 : f32
    %28 = vector.broadcast %cst_18 : f32 to vector<8x1xf32>
    %29 = arith.addf %28, %27 : vector<8x1xf32>
    %30 = tpu.reciprocal %29 {approx = true} : vector<8x1xf32> -> vector<8x1xf32>
    %c0_19 = arith.constant 0 : index
    %c0_20 = arith.constant 0 : index
    %31 = vector.load %arg8[%c0_19, %c0_20] : memref<8x1xf32, #tpu.memory_space<vmem>>, vector<8x1xf32>
    tpu.vector_store %arg8[%c0_19, %c0_20], %30 {strides = array<i32>} : memref<8x1xf32, #tpu.memory_space<vmem>>, vector<8x1xf32>,
    return
  }
  func.func @transform_0(%arg0: i32) -> (i32, i32) {
    %c0_i32 = arith.constant 0 : i32
    %c0_i32_0 = arith.constant 0 : i32
    return %arg0, %c0_i32 : i32, i32
  }
  func.func @transform_1(%arg0: i32) -> (i32, i32) {
    %c0_i32 = arith.constant 0 : i32
    %c0_i32_0 = arith.constant 0 : i32
    %c0_i32_1 = arith.constant 0 : i32
    return %c0_i32, %c0_i32_0 : i32, i32
  }
  func.func @transform_2(%arg0: i32) -> (i32, i32) {
    %c0_i32 = arith.constant 0 : i32
    %c0_i32_0 = arith.constant 0 : i32
    %c0_i32_1 = arith.constant 0 : i32
    return %c0_i32, %c0_i32_0 : i32, i32
  }
  func.func @transform_3(%arg0: i32) -> (i32, i32) {
    %c0_i32 = arith.constant 0 : i32
    %c0_i32_0 = arith.constant 0 : i32
    %c0_i32_1 = arith.constant 0 : i32
    return %c0_i32, %c0_i32_0 : i32, i32
  }
  func.func @transform_4(%arg0: i32) -> (i32, i32) {
    %c0_i32 = arith.constant 0 : i32
    %c0_i32_0 = arith.constant 0 : i32
    %c0_i32_1 = arith.constant 0 : i32
    return %c0_i32, %c0_i32_0 : i32, i32
  }
  func.func @transform_5(%arg0: i32) -> (i32, i32) {
    %c0_i32 = arith.constant 0 : i32
    %c0_i32_0 = arith.constant 0 : i32
    %c0_i32_1 = arith.constant 0 : i32
    return %c0_i32, %c0_i32_0 : i32, i32
  }
  func.func @transform_6(%arg0: i32) -> (i32, i32) {
    %c0_i32 = arith.constant 0 : i32
    %c0_i32_0 = arith.constant 0 : i32
    %c0_i32_1 = arith.constant 0 : i32
    return %c0_i32, %c0_i32_0 : i32, i32
  }
  func.func @transform_7(%arg0: i32) -> (i32, i32) {
    %c0_i32 = arith.constant 0 : i32
    %c0_i32_0 = arith.constant 0 : i32
    return %arg0, %c0_i32 : i32, i32
  }
}

</mosaic_0001>

<bundles_post_ra>
// kernel: discriminator_forward.1
= control target key start
LH: loop header
LB: loop body
LE: loop exit
PB: predicated region body
PF: predicated region fallthrough
CT: control target
= control target key end

     0   :  { %s801_s0 = inlined_call_operand.hbm [shape: f32[8,100], index: 0, kind: input, shape index: {}]   ;;  %s802_s1 = inlined_call_operand.hbm [shape: bf16[100,256], index: 1, kind: input, shape index: {}]   ;;  %s803_s2 = inlined_call_operand.vmem [shape: f32[1,256], index: 2, kind: input, shape index: {}]   ;;  %s804_s3 = inlined_call_operand.hbm [shape: bf16[256,256], index: 3, kind: input, shape index: {}]   ;;  %s805_s4 = inlined_call_operand.vmem [shape: f32[1,256], index: 4, kind: input, shape index: {}]   ;;  %s806_s5 = inlined_call_operand.vmem [shape: f32[1,256], index: 5, kind: input, shape index: {}]   ;;  %s807_s6 = inlined_call_operand.<no memory space> [shape: f32[1,1], index: 6, kind: input, shape index: {}]   ;;  %s808_s7 = inlined_call_operand.vmem [shape: f32[8,1], index: 7, kind: output, shape index: {}]  }
   0x1   :  { %v12_v0 = vstv %s807_s6 }
   0x2   :  { %13 = vst [vmem:[#allocation2] sm:$0x1] %v12_v0 }
   0x3   :  { %14 = vsyncpa [#allocation4], 0 }
   0x4   :  { %15 = vsyncpa [#allocation6], 0  ;;  %s698_s26 = smov [#allocation5]   ;;  %s628_s30 = scalar_lea.hbm %s802_s1, 1664 }
   0x5   :  { %s31_s27 = sshll.u32 %s698_s26, 4  ;;  %p629_p0 = scmp.ne.s32.totalorder %s802_s1, %s628_s30  ;;  %s32_s27 = int_to_ptr.vmem [resolvable:$true] %s31_s27 }
   0x6   :  { %p632_p1 = scmp.lt.u32.totalorder %s628_s30, %s802_s1 }
   0x8   :  { %p634_p2 = pnand %p632_p1, %p629_p0 }
   0xa   :  { %637 = shalt.err (!%p634_p2)
}
   0xb   :  { %s638_s6 = scalar_lea.vmem %s32_s27, 1664  ;;  %p643_p4 = scmp.lt.s32.totalorder %s32_s27, %s32_s27 }
   0xc   :  { %p639_p3 = scmp.ne.s32.totalorder %s32_s27, %s638_s6  ;;  %p644_p5 = scmp.lt.s32.totalorder %s638_s6, %s638_s6 }
   0xe   :  { %p645_p6 = por %p644_p5, %p643_p4 }
  0x10   :  { %p646_p7 = pnand %p645_p6, %p639_p3 }
  0x12   :  { %649 = shalt.err (!%p646_p7)
}
  0x13   :  { %s699_s12 = smov 128   ;;  %s700_s13 = smov 8  }
  0x14   :  { %37 = dma.hbm_to_vmem [thread:$0]  %s802_s1, 1664, %s32_s27, [#allocation6], %s699_s12, %s699_s12, %s700_s13  }
  0x15   :  { %s701_s16 = smov [#allocation3]   ;;  %s702_s18 = smov [#allocation7]  }
  0x16   :  { %s22_s17 = sshll.u32 %s701_s16, 4  ;;  %s45_s19 = sshll.u32 %s702_s18, 4  ;;  %s23_s17 = int_to_ptr.vmem [resolvable:$true] %s22_s17  ;;  %s46_s19 = int_to_ptr.vmem [resolvable:$true] %s45_s19 }
  0x17   :  { %s650_s22 = scalar_lea.hbm %s801_s0, 128 }
  0x18   :  { %p651_p8 = scmp.ne.s32.totalorder %s801_s0, %s650_s22  ;;  %p654_p9 = scmp.lt.u32.totalorder %s650_s22, %s801_s0 }
  0x1a   :  { %p656_p10 = pnand %p654_p9, %p651_p8 }
  0x1c   :  { %659 = shalt.err (!%p656_p10)
}
  0x1d   :  { %s660_s1 = scalar_lea.vmem %s23_s17, 128  ;;  %p665_p12 = scmp.lt.s32.totalorder %s23_s17, %s23_s17 }
  0x1e   :  { %p661_p11 = scmp.ne.s32.totalorder %s23_s17, %s660_s1  ;;  %p666_p13 = scmp.lt.s32.totalorder %s660_s1, %s660_s1 }
  0x20   :  { %p667_p0 = por %p666_p13, %p665_p12 }
  0x22   :  { %p668_p1 = pnand %p667_p0, %p661_p11 }
  0x24   :  { %671 = shalt.err (!%p668_p1)
}
  0x25   :  { %25 = dma.hbm_to_vmem [thread:$0]  %s801_s0, 128, %s23_s17, [#allocation4]  }
  0x26   :  { %s672_s8 = scalar_lea.hbm %s804_s3, 4096 }
  0x27   :  { %p673_p2 = scmp.ne.s32.totalorder %s804_s3, %s672_s8  ;;  %p676_p3 = scmp.lt.u32.totalorder %s672_s8, %s804_s3 }
  0x29   :  { %p678_p4 = pnand %p676_p3, %p673_p2 }
  0x2b   :  { %681 = shalt.err (!%p678_p4)
}
  0x2c   :  { %s682_s14 = scalar_lea.vmem %s46_s19, 4096  ;;  %p687_p6 = scmp.lt.s32.totalorder %s46_s19, %s46_s19 }
  0x2d   :  { %p683_p5 = scmp.ne.s32.totalorder %s46_s19, %s682_s14  ;;  %p688_p7 = scmp.lt.s32.totalorder %s682_s14, %s682_s14 }
  0x2f   :  { %p689_p8 = por %p688_p7, %p687_p6 }
  0x31   :  { %p690_p9 = pnand %p689_p8, %p683_p5 }
  0x33   :  { %693 = shalt.err (!%p690_p9)
}
  0x34   :  { %51 = dma.hbm_to_vmem [thread:$0]  %s804_s3, 4096, %s46_s19, [#allocation6], %s699_s12, %s699_s12, %s700_s13  }
  0x35   :  { %694 = dma.done.wait [#allocation4], 128  }
  0x36   :  { %695 = vsyncadd [#allocation4], 4294967168 }
  0x37   :  { %696 = dma.done.wait [#allocation6], 5760  }
  0x38   :  { %697 = vsyncadd [#allocation6], 4294961536  ;;  %v703_v1 = vmov 0   ;;  %v556_v2 = vld [vmem:[#allocation5 + $0x4] ss:$8 sps:$4 sm:$0xff]   ;;  %vm164_vm0 = vcmask 1041408   ;;  %v85_v52 = vlaneseq }
  0x39   :  { %203 = vmatprep.mubr.bf16.mxu0 %v703_v1  ;;  %v558_v3 = vld [vmem:[#allocation5] ss:$8 sps:$4 sm:$0xff]   ;;  %171 = vmatprep.subr.bf16.mxu0 %v556_v2  ;;  %v559_v4 = vld [vmem:[#allocation5 + $0x14] ss:$8 sps:$4 sm:$0xff]   ;;  %v561_v5 = vld [vmem:[#allocation5 + $0x10] ss:$8 sps:$4 sm:$0xff]  }
  0x3a   :  { %172 = vmatpush1.bf16.msra.mxu0 %v558_v3  ;;  %v562_v6 = vld [vmem:[#allocation5 + $0x24] ss:$8 sps:$4 sm:$0xff]   ;;  %v564_v7 = vld [vmem:[#allocation5 + $0x20] ss:$8 sps:$4 sm:$0xff]   ;;  %v565_v8 = vld [vmem:[#allocation5 + $0x34] ss:$8 sps:$4 sm:$0xff]  }
  0x3b   :  { %173 = vmatprep.subr.bf16.mxu0 %v559_v4  ;;  %v576_v9 = vld [vmem:[#allocation7 + $0x4] ss:$8 sps:$4 sm:$0xff]   ;;  %v578_v10 = vld [vmem:[#allocation7] ss:$8 sps:$4 sm:$0xff]   ;;  %v579_v11 = vld [vmem:[#allocation7 + $0x14] ss:$8 sps:$4 sm:$0xff]  }
  0x3c   :  { %v567_v12 = vld [vmem:[#allocation5 + $0x30] ss:$8 sps:$4 sm:$0xff]   ;;  %420 = vmatprep.subr.bf16.mxu1 %v576_v9  ;;  %v568_v13 = vld [vmem:[#allocation5 + $0x44] ss:$8 sps:$4 sm:$0xff]   ;;  %v570_v16 = vld [vmem:[#allocation5 + $0x40] ss:$8 sps:$4 sm:$0xff]  }
  0x3d   :  { %421 = vmatpush1.bf16.msra.mxu1 %v578_v10  ;;  %v581_v14 = vld [vmem:[#allocation7 + $0x10] ss:$8 sps:$4 sm:$0xff]   ;;  %v582_v15 = vld [vmem:[#allocation7 + $0x24] ss:$8 sps:$4 sm:$0xff]   ;;  %v584_v18 = vld [vmem:[#allocation7 + $0x20] ss:$8 sps:$4 sm:$0xff]  }
  0x3e   :  { %174 = vmatpush1.bf16.msra.mxu0 %v561_v5  ;;  %422 = vmatprep.subr.bf16.mxu1 %v579_v11  ;;  %v571_v17 = vld [vmem:[#allocation5 + $0x54] ss:$8 sps:$4 sm:$0xff]   ;;  %v82_v19 = vld [vmem:[#allocation5 + $0x60] sm:$0x33]  ;;  %v573_v21 = vld [vmem:[#allocation5 + $0x50] ss:$8 sps:$4 sm:$0xff]  }
  0x3f   :  { %175 = vmatprep.subr.bf16.mxu0 %v562_v6  ;;  %v585_v20 = vld [vmem:[#allocation7 + $0x34] ss:$8 sps:$4 sm:$0xff]   ;;  %v514_v22 = vcombine.high %v82_v19, %v82_v19  ;;  %v513_v23 = vcombine.low %v82_v19, %v82_v19  ;;  %v587_v24 = vld [vmem:[#allocation7 + $0x30] ss:$8 sps:$4 sm:$0xff]   ;;  %v588_v25 = vld [vmem:[#allocation7 + $0x44] ss:$8 sps:$4 sm:$0xff]  }
  0x40   :  { %v68_v26 = vld [vmem:[#allocation3] sm:$0xff]  ;;  %v590_v28 = vld [vmem:[#allocation7 + $0x40] ss:$8 sps:$4 sm:$0xff]   ;;  %vm160_vm1 = vcmask 818176   ;;  %v594_v32 = vld [vmem:[#allocation7 + $0x64] ss:$8 sps:$4 sm:$0xff]  }
  0x41   :  { %423 = vmatpush1.bf16.msra.mxu1 %v581_v14  ;;  %v166_v27 = vsel %vm164_vm0, %v513_v23, 0  ;;  %v591_v29 = vld [vmem:[#allocation7 + $0x54] ss:$8 sps:$4 sm:$0xff]   ;;  %v69_v30 = vpack.c.bf16 %v68_v26, %v68_v26  ;;  %v593_v31 = vld [vmem:[#allocation7 + $0x50] ss:$8 sps:$4 sm:$0xff]   ;;  %v86_v53 = vshrl.u32 %v85_v52, 7 }
  0x42   :  { %176 = vmatpush1.bf16.msra.mxu0 %v564_v7  ;;  %424 = vmatprep.subr.bf16.mxu1 %v582_v15  ;;  %v596_v33 = vld [vmem:[#allocation7 + $0x60] ss:$8 sps:$4 sm:$0xff]   ;;  %v597_v34 = vld [vmem:[#allocation7 + $0x74] ss:$8 sps:$4 sm:$0xff]   ;;  %v599_v35 = vld [vmem:[#allocation7 + $0x70] ss:$8 sps:$4 sm:$0xff]  }
  0x43   :  { %177 = vmatprep.subr.bf16.mxu0 %v565_v8  ;;  %v600_v36 = vld [vmem:[#allocation7 + $0x84] ss:$8 sps:$4 sm:$0xff]   ;;  %v602_v37 = vld [vmem:[#allocation7 + $0x80] ss:$8 sps:$4 sm:$0xff]   ;;  %v603_v38 = vld [vmem:[#allocation7 + $0x94] ss:$8 sps:$4 sm:$0xff]  }
  0x44   :  { %v605_v39 = vld [vmem:[#allocation7 + $0x90] ss:$8 sps:$4 sm:$0xff]   ;;  %v606_v40 = vld [vmem:[#allocation7 + $0xa4] ss:$8 sps:$4 sm:$0xff]   ;;  %v608_v41 = vld [vmem:[#allocation7 + $0xa0] ss:$8 sps:$4 sm:$0xff]  }
  0x45   :  { %425 = vmatpush1.bf16.msra.mxu1 %v584_v18  ;;  %v609_v42 = vld [vmem:[#allocation7 + $0xb4] ss:$8 sps:$4 sm:$0xff]   ;;  %v611_v43 = vld [vmem:[#allocation7 + $0xb0] ss:$8 sps:$4 sm:$0xff]   ;;  %v612_v44 = vld [vmem:[#allocation7 + $0xc4] ss:$8 sps:$4 sm:$0xff]  }
  0x46   :  { %178 = vmatpush1.bf16.msra.mxu0 %v567_v12  ;;  %426 = vmatprep.subr.bf16.mxu1 %v585_v20  ;;  %v614_v45 = vld [vmem:[#allocation7 + $0xc0] ss:$8 sps:$4 sm:$0xff]   ;;  %v615_v46 = vld [vmem:[#allocation7 + $0xd4] ss:$8 sps:$4 sm:$0xff]   ;;  %v617_v47 = vld [vmem:[#allocation7 + $0xd0] ss:$8 sps:$4 sm:$0xff]  }
  0x47   :  { %179 = vmatprep.subr.bf16.mxu0 %v568_v13  ;;  %v618_v48 = vld [vmem:[#allocation7 + $0xe4] ss:$8 sps:$4 sm:$0xff]   ;;  %v620_v49 = vld [vmem:[#allocation7 + $0xe0] ss:$8 sps:$4 sm:$0xff]   ;;  %v621_v50 = vld [vmem:[#allocation7 + $0xf4] ss:$8 sps:$4 sm:$0xff]  }
  0x48   :  { %v623_v51 = vld [vmem:[#allocation7 + $0xf0] ss:$8 sps:$4 sm:$0xff]   ;;  %v87_v54 = vsub.s32 0, %v86_v53  ;;  %v91_v56 = vsub.s32 1, %v86_v53  ;;  %vm493_vm2 = vcmask 7168  }
  0x49   :  { %427 = vmatpush1.bf16.msra.mxu1 %v587_v24  ;;  %v83_v55 = vld [vmem:[%s803_s2] sm:$0x3] }
  0x4a   :  { %180 = vmatpush1.bf16.msra.mxu0 %v570_v16  ;;  %428 = vmatprep.subr.bf16.mxu1 %v588_v25  ;;  %v88_v57 = vrot.slane %v83_v55, %v87_v54  ;;  %v92_v58 = vrot.slane %v83_v55, %v91_v56  ;;  %v248_v5 = vld [vmem:[%s805_s4] sm:$0x3] }
  0x4b   :  { %181 = vmatprep.subr.bf16.mxu0 %v571_v17  ;;  %v253_v6 = vrot.slane %v248_v5, %v87_v54  ;;  %v257_v7 = vrot.slane %v248_v5, %v91_v56  ;;  %v463_v8 = vld [vmem:[%s806_s5] sm:$0x3] }
  0x4c   :  { %v468_v12 = vrot.slane %v463_v8, %v87_v54  ;;  %v472_v15 = vrot.slane %v463_v8, %v91_v56 }
  0x4d   :  { %429 = vmatpush1.bf16.msra.mxu1 %v590_v28 }
  0x4e   :  { %182 = vmatpush1.bf16.msra.mxu0 %v573_v21  ;;  %430 = vmatprep.subr.bf16.mxu1 %v591_v29 }
  0x4f   :  { %515 = vmatprep.subr.msk.bf16.mxu0 %vm164_vm0, %v514_v22  ;;  %v549_v22 = vld [vmem:[#allocation2] ss:$0 sm:$0xff] }
  0x51   :  { %431 = vmatpush1.bf16.msra.mxu1 %v593_v31 }
  0x52   :  { %184 = vmatpush1.bf16.msra.mxu0 %v166_v27  ;;  %432 = vmatprep.subr.bf16.mxu1 %v594_v32 }
  0x55   :  { %516 = vmatmul.mubr.msk.bf16.vlgmr.msra.gmra.mrb[0].mxu0 %vm160_vm1, %v69_v30  ;;  %433 = vmatpush1.bf16.msra.mxu1 %v596_v33 }
  0x56   :  { %434 = vmatprep.subr.bf16.mxu1 %v597_v34 }
  0x59   :  { %435 = vmatpush1.bf16.msra.mxu1 %v599_v35 }
  0x5a   :  { %436 = vmatprep.subr.bf16.mxu1 %v600_v36 }
  0x5d   :  { %437 = vmatpush1.bf16.msra.mxu1 %v602_v37 }
  0x5e   :  { %438 = vmatprep.subr.bf16.mxu1 %v603_v38 }
  0x61   :  { %439 = vmatpush1.bf16.msra.mxu1 %v605_v39 }
  0x62   :  { %440 = vmatprep.subr.bf16.mxu1 %v606_v40 }
  0x65   :  { %441 = vmatpush1.bf16.msra.mxu1 %v608_v41 }
  0x66   :  { %442 = vmatprep.subr.bf16.mxu1 %v609_v42 }
  0x69   :  { %443 = vmatpush1.bf16.msra.mxu1 %v611_v43 }
  0x6a   :  { %444 = vmatprep.subr.bf16.mxu1 %v612_v44 }
  0x6d   :  { %445 = vmatpush1.bf16.msra.mxu1 %v614_v45 }
  0x6e   :  { %446 = vmatprep.subr.bf16.mxu1 %v615_v46 }
  0x71   :  { %447 = vmatpush1.bf16.msra.mxu1 %v617_v47 }
  0x72   :  { %448 = vmatprep.subr.bf16.mxu1 %v618_v48 }
  0x75   :  { %449 = vmatpush1.bf16.msra.mxu1 %v620_v49 }
  0x76   :  { %450 = vmatprep.subr.bf16.mxu1 %v621_v50 }
  0x79   :  { %451 = vmatpush1.bf16.msra.mxu1 %v623_v51 }
 0x128   :  { %v205_v59 = vpop.f32.mrb[0].mxu0 }
 0x129   :  { %v206_v60 = vadd.f32 %v205_v59, %v88_v57  ;;  %v207_v61 = vpop.f32.mrb[1].mxu0 }
 0x12a   :  { %v208_v62 = vadd.f32 %v207_v61, %v92_v58  ;;  %v209_v63 = vpop.f32.mrb[2].mxu0 }
 0x12b   :  { %v212_v0 = vmax.f32 %v206_v60, 0.0  ;;  %v210_v1 = vpop.f32.mrb[3].mxu0 }
 0x12c   :  { %v213_v2 = vmax.f32 %v208_v62, 0.0 }
 0x12d   :  { %v214_v4 = vpack.c.bf16 %v212_v0, %v212_v0 }
 0x12e   :  { %v215_v3 = vpack.c.bf16 %v213_v2, %v213_v2 }
 0x130   :  { %452 = vmatprep.mubr.bf16.mxu1 %v215_v3 }
 0x131   :  { %453 = vmatmul.mubr.bf16.vlgmr.msra.gmra.mrb[0].mxu1 %v214_v4 }
 0x204   :  { %v454_v9 = vpop.f32.mrb[0].mxu1 }
 0x205   :  { %v455_v10 = vadd.f32 %v454_v9, %v253_v6  ;;  %v456_v11 = vpop.f32.mrb[1].mxu1 }
 0x206   :  { %v457_v13 = vadd.f32 %v456_v11, %v257_v7  ;;  %v458_v14 = vpop.f32.mrb[2].mxu1 }
 0x207   :  { %v461_v16 = vmax.f32 %v455_v10, 0.0  ;;  %v459_v17 = vpop.f32.mrb[3].mxu1 }
 0x208   :  { %v462_v18 = vmax.f32 %v457_v13, 0.0 }
 0x209   :  { %v475_v19 = vmul.f32 %v468_v12, %v461_v16 }
 0x20a   :  { %v476_v20 = vmul.f32 %v472_v15, %v462_v18 }
 0x20c   :  { %v477_v21 = vadd.f32 %v476_v20, %v475_v19 }
 0x20e   :  { %478 = vadd.xlane.f32.xlu0 %v477_v21 }
 0x29b   :  { %v479_v23 = vpop.xlane.xlu0 %478 }
 0x29c   :  { %v487_v24 = vadd.f32 %v549_v22, %v479_v23 }
 0x29e   :  { %v488_v25 = vsub.f32 0.0, %v487_v24 }
 0x2a0   :  { %v489_v26 = vmul.f32 1.442695, %v488_v25 }
 0x2a2   :  { %624 = vpow2.f32 %v489_v26 }
 0x2ac   :  { %v625_v27 = vpop.eup %624 }
 0x2ad   :  { %v491_v28 = vadd.f32 1.0, %v625_v27 }
 0x2af   :  { %626 = vrcp.f32 %v491_v28 }
 0x2b9   :  { %v627_v29 = vpop.eup %626 }
 0x2ba   :  { %494 = vst.msk [vmem:[%s808_s7] sm:$0xff] %vm493_vm2, %v627_v29 }
 0x2bb   :  { %499 = vsyncpa [#allocation4], 1 }
 0x2bc   :  { %500 = vsyncpa [#allocation6], 1 }

</bundles_post_ra>
